<compile_context>
chip_gen: v7x
topology: tpu7x:2x2x1
jax: 0.10.0
libtpu: 0.0.40
codegen_flags: <defaults>
</compile_context>

<pallas_src>
import jax
import jax.numpy as jnp
from jax import lax
from jax.experimental import pallas as pl

# ----- module hyper-parameters (small, consistent with the forward) -----
N_HEAD = 4
N_EMBED = 32
BLOCK_SIZE = 8                      # max sequence length (size of the tril buffer)
HEAD_SIZE = N_EMBED // N_HEAD       # = 8 (module also passes head_size explicitly)
SCALE = HEAD_SIZE ** (-0.5)

B = 2
T = BLOCK_SIZE                      # sequence length used at call time (T <= block_size)
NEG_BIG = -1e30                     # finite "minus infinity": no NaN risk


def mha_kernel(x_ref, wqkv_ref, wp_ref, bp_ref, o_ref):
    """Single-step kernel: fused QKV projection on (B*T, C), per-batch causal
    attention on (T, T) blocks, per-head accumulated output projection."""
    x = x_ref[...]                   # (B*T, C)
    wqkv = wqkv_ref[...]             # (C, 3C), query columns pre-scaled
    wp = wp_ref[...]                 # (C, C)
    bp = bp_ref[...]                 # (1, C)
    c = N_EMBED

    # Fused Q/K/V projection: one (B*T, C) @ (C, 3C) MXU matmul.
    qkv = jnp.dot(x, wqkv, preferred_element_type=jnp.float32)
    q = qkv[:, 0 * c:1 * c]          # already scaled by head_size**-0.5
    k = qkv[:, 1 * c:2 * c]
    v = qkv[:, 2 * c:3 * c]

    # Causal additive bias, generated in-kernel (no HBM->VMEM DMA, no
    # materialized (B*T)^2 buffer).
    row = lax.broadcasted_iota(jnp.int32, (T, T), 0)
    col = lax.broadcasted_iota(jnp.int32, (T, T), 1)
    causal_bias = jnp.where(row >= col, 0.0, NEG_BIG).astype(jnp.float32)

    # Static unroll over batch elements and heads (B=2, H=4 -> tiny, fully
    # resident in vregs; no scratch round-trips).
    for b in range(B):
        r0 = b * T
        r1 = r0 + T
        y = jnp.zeros((T, c), jnp.float32)     # output-projection accumulator
        for h in range(N_HEAD):
            lo = h * HEAD_SIZE
            hi = lo + HEAD_SIZE
            qh = q[r0:r1, lo:hi]               # (T, hd)
            kh = k[r0:r1, lo:hi]
            vh = v[r0:r1, lo:hi]

            # q @ k^T via dot_general (contract the shared head dim directly).
            wei = lax.dot_general(
                qh, kh, (((1,), (1,)), ((), ())),
                preferred_element_type=jnp.float32) + causal_bias
            m = jnp.max(wei, axis=-1, keepdims=True)
            p = jnp.exp(wei - m)
            p = p / jnp.sum(p, axis=-1, keepdims=True)   # exact divide

            o_h = jnp.dot(p, vh, preferred_element_type=jnp.float32)   # (T, hd)
            # Accumulate the output projection per head; Wp row-slices are
            # sublane-aligned (multiples of 8 rows).
            y = y + jnp.dot(o_h, wp[lo:hi, :], preferred_element_type=jnp.float32)

        # Dropout is identity in eval mode.
        o_ref[r0:r1, :] = (y + bp).astype(o_ref.dtype)


@jax.jit
def multi_head_attention(x, wq_t, wk_t, wv_t, wp_t, bp):
    b, t, c = x.shape
    bt = b * t
    # One-time parameter prep (constant-folded under jit): fold the attention
    # scale into W_query and fuse Q/K/V into a single (C, 3C) projection.
    wqkv_t = jnp.concatenate([wq_t * SCALE, wk_t, wv_t], axis=1)
    x2d = x.reshape(bt, c)

    out2d = pl.pallas_call(
        mha_kernel,
        out_shape=jax.ShapeDtypeStruct((bt, c), x.dtype),
        grid=(1,),                           # whole problem in one step
        in_specs=[
            pl.BlockSpec((bt, c), lambda i: (0, 0)),        # x (flattened batch)
            pl.BlockSpec((c, 3 * c), lambda i: (0, 0)),     # fused W_qkv^T
            pl.BlockSpec((c, c), lambda i: (0, 0)),         # W_proj^T
            pl.BlockSpec((1, c), lambda i: (0, 0)),         # b_proj (kept 2-D)
        ],
        out_specs=pl.BlockSpec((bt, c), lambda i: (0, 0)),
    )(x2d, wqkv_t, wp_t, bp)
    return out2d.reshape(b, t, c)


def reference(x, wq_t, wk_t, wv_t, wp_t, bp):
    """Plain-JAX reference mirroring the PyTorch forward (eval mode)."""
    b, t, c = x.shape
    q = x @ wq_t
    k = x @ wk_t
    v = x @ wv_t
    q = q.reshape(b, t, N_HEAD, HEAD_SIZE).transpose(0, 2, 1, 3)
    k = k.reshape(b, t, N_HEAD, HEAD_SIZE).transpose(0, 2, 1, 3)
    v = v.reshape(b, t, N_HEAD, HEAD_SIZE).transpose(0, 2, 1, 3)
    wei = jnp.einsum("bhqd,bhkd->bhqk", q, k) * SCALE
    mask = jnp.tril(jnp.ones((t, t), dtype=bool))
    wei = jnp.where(mask, wei, float("-inf"))
    wei = jax.nn.softmax(wei, axis=-1)
    out = jnp.einsum("bhqk,bhkd->bhqd", wei, v)
    out = out.transpose(0, 2, 1, 3).reshape(b, t, c)
    return out @ wp_t + bp[0]


if __name__ == "__main__":
    key = jax.random.PRNGKey(0)
    kx, kq, kk, kv, kp, kb = jax.random.split(key, 6)

    # Deterministic synthetic parameters (torch Linear weight is (out, in); we
    # store the pre-transposed (in, out) form directly).
    scale = 1.0 / jnp.sqrt(jnp.float32(N_EMBED))
    x = jax.random.normal(kx, (B, T, N_EMBED), dtype=jnp.float32)
    wq_t = jax.random.normal(kq, (N_EMBED, N_EMBED), dtype=jnp.float32) * scale
    wk_t = jax.random.normal(kk, (N_EMBED, N_EMBED), dtype=jnp.float32) * scale
    wv_t = jax.random.normal(kv, (N_EMBED, N_EMBED), dtype=jnp.float32) * scale
    wp_t = jax.random.normal(kp, (N_EMBED, N_EMBED), dtype=jnp.float32) * scale
    bp = jax.random.normal(kb, (1, N_EMBED), dtype=jnp.float32) * scale

    out = multi_head_attention(x, wq_t, wk_t, wv_t, wp_t, bp)
    out = jax.block_until_ready(out)

    ref = reference(x, wq_t, wk_t, wv_t, wp_t, bp)
    assert out.shape == (B, T, N_EMBED)
    # Fully exact f32 algorithm (no approximate reciprocal) -> tight tolerance.
    assert jnp.allclose(out, ref, atol=1e-4, rtol=1e-4), "mismatch vs reference"

    print("KERNEL_OK")
</pallas_src>

<mosaic_0001>
module attributes {stable_mosaic.version = 11 : i64} {
  func.func @mha_kernel(%arg0: i32, %arg1: memref<16x32xf32, #tpu.memory_space<vmem>>, %arg2: memref<32x96xf32, #tpu.memory_space<vmem>>, %arg3: memref<32x32xf32, #tpu.memory_space<vmem>>, %arg4: memref<1x32xf32, #tpu.memory_space<vmem>>, %arg5: memref<16x32xf32, #tpu.memory_space<vmem>>) attributes {dimension_semantics = [#tpu.dimension_semantics<arbitrary>], iteration_bounds = array<i64: 1>, scalar_prefetch = 0 : i64, scratch_operands = 0 : i64, tpu.core_type = #tpu.core_type<tc>, window_params = [{pipeline_mode = #tpu.pipeline_mode<synchronous>, transform_indices = @transform_0, window_bounds = array<i64: 16, 32>}, {pipeline_mode = #tpu.pipeline_mode<synchronous>, transform_indices = @transform_1, window_bounds = array<i64: 32, 96>}, {pipeline_mode = #tpu.pipeline_mode<synchronous>, transform_indices = @transform_2, window_bounds = array<i64: 32, 32>}, {pipeline_mode = #tpu.pipeline_mode<synchronous>, transform_indices = @transform_3, window_bounds = array<i64: 1, 32>}, {pipeline_mode = #tpu.pipeline_mode<synchronous>, transform_indices = @transform_4, window_bounds = array<i64: 16, 32>}]} {
    %c0 = arith.constant 0 : index
    %c0_0 = arith.constant 0 : index
    %0 = vector.load %arg1[%c0, %c0_0] : memref<16x32xf32, #tpu.memory_space<vmem>>, vector<16x32xf32>
    %c0_1 = arith.constant 0 : index
    %c0_2 = arith.constant 0 : index
    %1 = vector.load %arg2[%c0_1, %c0_2] : memref<32x96xf32, #tpu.memory_space<vmem>>, vector<32x96xf32>
    %c0_3 = arith.constant 0 : index
    %c0_4 = arith.constant 0 : index
    %2 = vector.load %arg3[%c0_3, %c0_4] : memref<32x32xf32, #tpu.memory_space<vmem>>, vector<32x32xf32>
    %c0_5 = arith.constant 0 : index
    %c0_6 = arith.constant 0 : index
    %3 = vector.load %arg4[%c0_5, %c0_6] : memref<1x32xf32, #tpu.memory_space<vmem>>, vector<1x32xf32>
    %cst = arith.constant dense<0.000000e+00> : vector<16x96xf32>
    %4 = tpu.matmul %0, %1, %cst {dimension_numbers = #tpu.dot_dimension_numbers<[1], [0], [0], [1], [0, 0, 1, 1], [], []>} : vector<16x32xf32>, vector<32x96xf32>, vector<16x96xf32> -> vector<16x96xf32>
    %5 = vector.extract_strided_slice %4 {offsets = [0, 0], sizes = [16, 32], strides = [1, 1]} : vector<16x96xf32> to vector<16x32xf32>
    %6 = vector.extract_strided_slice %4 {offsets = [0, 32], sizes = [16, 32], strides = [1, 1]} : vector<16x96xf32> to vector<16x32xf32>
    %7 = vector.extract_strided_slice %4 {offsets = [0, 64], sizes = [16, 32], strides = [1, 1]} : vector<16x96xf32> to vector<16x32xf32>
    %8 = tpu.iota {dimensions = array<i32: 0>} : vector<8x8xi32>
    %9 = tpu.iota {dimensions = array<i32: 1>} : vector<8x8xi32>
    %10 = arith.cmpi sge, %8, %9 : vector<8x8xi32>
    %cst_7 = arith.constant 0.000000e+00 : f32
    %cst_8 = arith.constant -1.000000e+30 : f32
    %11 = vector.broadcast %cst_7 : f32 to vector<8x8xf32>
    %12 = vector.broadcast %cst_8 : f32 to vector<8x8xf32>
    %13 = arith.select %10, %11, %12 : vector<8x8xi1>, vector<8x8xf32>
    %cst_9 = arith.constant 0.000000e+00 : f32
    %14 = vector.broadcast %cst_9 : f32 to vector<8x32xf32>
    %15 = vector.extract_strided_slice %5 {offsets = [0, 0], sizes = [8, 8], strides = [1, 1]} : vector<16x32xf32> to vector<8x8xf32>
    %16 = vector.extract_strided_slice %6 {offsets = [0, 0], sizes = [8, 8], strides = [1, 1]} : vector<16x32xf32> to vector<8x8xf32>
    %17 = vector.extract_strided_slice %7 {offsets = [0, 0], sizes = [8, 8], strides = [1, 1]} : vector<16x32xf32> to vector<8x8xf32>
    %cst_10 = arith.constant dense<0.000000e+00> : vector<8x8xf32>
    %18 = tpu.matmul %15, %16, %cst_10 {dimension_numbers = #tpu.dot_dimension_numbers<[1], [1], [0], [0], [0, 0, 1, 0], [], []>} : vector<8x8xf32>, vector<8x8xf32>, vector<8x8xf32> -> vector<8x8xf32>
    %19 = arith.addf %18, %13 : vector<8x8xf32>
    %cst_11 = arith.constant dense<0xFF800000> : vector<8xf32>
    %20 = vector.multi_reduction <maximumf>, %19, %cst_11 [1] : vector<8x8xf32> to vector<8xf32>
    %21 = vector.shape_cast %20 : vector<8xf32> to vector<8x1xf32>
    %22 = vector.broadcast %21 : vector<8x1xf32> to vector<8x8xf32>
    %23 = arith.subf %19, %22 : vector<8x8xf32>
    %24 = math.exp %23 : vector<8x8xf32>
    %cst_12 = arith.constant dense<0.000000e+00> : vector<8xf32>
    %25 = vector.multi_reduction <add>, %24, %cst_12 [1] : vector<8x8xf32> to vector<8xf32>
    %26 = vector.shape_cast %25 : vector<8xf32> to vector<8x1xf32>
    %27 = vector.broadcast %26 : vector<8x1xf32> to vector<8x8xf32>
    %28 = arith.divf %24, %27 : vector<8x8xf32>
    %cst_13 = arith.constant dense<0.000000e+00> : vector<8x8xf32>
    %29 = tpu.matmul %28, %17, %cst_13 {dimension_numbers = #tpu.dot_dimension_numbers<[1], [0], [0], [1], [0, 0, 1, 1], [], []>} : vector<8x8xf32>, vector<8x8xf32>, vector<8x8xf32> -> vector<8x8xf32>
    %30 = vector.extract_strided_slice %2 {offsets = [0, 0], sizes = [8, 32], strides = [1, 1]} : vector<32x32xf32> to vector<8x32xf32>
    %cst_14 = arith.constant dense<0.000000e+00> : vector<8x32xf32>
    %31 = tpu.matmul %29, %30, %cst_14 {dimension_numbers = #tpu.dot_dimension_numbers<[1], [0], [0], [1], [0, 0, 1, 1], [], []>} : vector<8x8xf32>, vector<8x32xf32>, vector<8x32xf32> -> vector<8x32xf32>
    %32 = arith.addf %14, %31 : vector<8x32xf32>
    %33 = vector.extract_strided_slice %5 {offsets = [0, 8], sizes = [8, 8], strides = [1, 1]} : vector<16x32xf32> to vector<8x8xf32>
    %34 = vector.extract_strided_slice %6 {offsets = [0, 8], sizes = [8, 8], strides = [1, 1]} : vector<16x32xf32> to vector<8x8xf32>
    %35 = vector.extract_strided_slice %7 {offsets = [0, 8], sizes = [8, 8], strides = [1, 1]} : vector<16x32xf32> to vector<8x8xf32>
    %cst_15 = arith.constant dense<0.000000e+00> : vector<8x8xf32>
    %36 = tpu.matmul %33, %34, %cst_15 {dimension_numbers = #tpu.dot_dimension_numbers<[1], [1], [0], [0], [0, 0, 1, 0], [], []>} : vector<8x8xf32>, vector<8x8xf32>, vector<8x8xf32> -> vector<8x8xf32>
    %37 = arith.addf %36, %13 : vector<8x8xf32>
    %cst_16 = arith.constant dense<0xFF800000> : vector<8xf32>
    %38 = vector.multi_reduction <maximumf>, %37, %cst_16 [1] : vector<8x8xf32> to vector<8xf32>
    %39 = vector.shape_cast %38 : vector<8xf32> to vector<8x1xf32>
    %40 = vector.broadcast %39 : vector<8x1xf32> to vector<8x8xf32>
    %41 = arith.subf %37, %40 : vector<8x8xf32>
    %42 = math.exp %41 : vector<8x8xf32>
    %cst_17 = arith.constant dense<0.000000e+00> : vector<8xf32>
    %43 = vector.multi_reduction <add>, %42, %cst_17 [1] : vector<8x8xf32> to vector<8xf32>
    %44 = vector.shape_cast %43 : vector<8xf32> to vector<8x1xf32>
    %45 = vector.broadcast %44 : vector<8x1xf32> to vector<8x8xf32>
    %46 = arith.divf %42, %45 : vector<8x8xf32>
    %cst_18 = arith.constant dense<0.000000e+00> : vector<8x8xf32>
    %47 = tpu.matmul %46, %35, %cst_18 {dimension_numbers = #tpu.dot_dimension_numbers<[1], [0], [0], [1], [0, 0, 1, 1], [], []>} : vector<8x8xf32>, vector<8x8xf32>, vector<8x8xf32> -> vector<8x8xf32>
    %48 = vector.extract_strided_slice %2 {offsets = [8, 0], sizes = [8, 32], strides = [1, 1]} : vector<32x32xf32> to vector<8x32xf32>
    %cst_19 = arith.constant dense<0.000000e+00> : vector<8x32xf32>
    %49 = tpu.matmul %47, %48, %cst_19 {dimension_numbers = #tpu.dot_dimension_numbers<[1], [0], [0], [1], [0, 0, 1, 1], [], []>} : vector<8x8xf32>, vector<8x32xf32>, vector<8x32xf32> -> vector<8x32xf32>
    %50 = arith.addf %32, %49 : vector<8x32xf32>
    %51 = vector.extract_strided_slice %5 {offsets = [0, 16], sizes = [8, 8], strides = [1, 1]} : vector<16x32xf32> to vector<8x8xf32>
    %52 = vector.extract_strided_slice %6 {offsets = [0, 16], sizes = [8, 8], strides = [1, 1]} : vector<16x32xf32> to vector<8x8xf32>
    %53 = vector.extract_strided_slice %7 {offsets = [0, 16], sizes = [8, 8], strides = [1, 1]} : vector<16x32xf32> to vector<8x8xf32>
    %cst_20 = arith.constant dense<0.000000e+00> : vector<8x8xf32>
    %54 = tpu.matmul %51, %52, %cst_20 {dimension_numbers = #tpu.dot_dimension_numbers<[1], [1], [0], [0], [0, 0, 1, 0], [], []>} : vector<8x8xf32>, vector<8x8xf32>, vector<8x8xf32> -> vector<8x8xf32>
    %55 = arith.addf %54, %13 : vector<8x8xf32>
    %cst_21 = arith.constant dense<0xFF800000> : vector<8xf32>
    %56 = vector.multi_reduction <maximumf>, %55, %cst_21 [1] : vector<8x8xf32> to vector<8xf32>
    %57 = vector.shape_cast %56 : vector<8xf32> to vector<8x1xf32>
    %58 = vector.broadcast %57 : vector<8x1xf32> to vector<8x8xf32>
    %59 = arith.subf %55, %58 : vector<8x8xf32>
    %60 = math.exp %59 : vector<8x8xf32>
    %cst_22 = arith.constant dense<0.000000e+00> : vector<8xf32>
    %61 = vector.multi_reduction <add>, %60, %cst_22 [1] : vector<8x8xf32> to vector<8xf32>
    %62 = vector.shape_cast %61 : vector<8xf32> to vector<8x1xf32>
    %63 = vector.broadcast %62 : vector<8x1xf32> to vector<8x8xf32>
    %64 = arith.divf %60, %63 : vector<8x8xf32>
    %cst_23 = arith.constant dense<0.000000e+00> : vector<8x8xf32>
    %65 = tpu.matmul %64, %53, %cst_23 {dimension_numbers = #tpu.dot_dimension_numbers<[1], [0], [0], [1], [0, 0, 1, 1], [], []>} : vector<8x8xf32>, vector<8x8xf32>, vector<8x8xf32> -> vector<8x8xf32>
    %66 = vector.extract_strided_slice %2 {offsets = [16, 0], sizes = [8, 32], strides = [1, 1]} : vector<32x32xf32> to vector<8x32xf32>
    %cst_24 = arith.constant dense<0.000000e+00> : vector<8x32xf32>
    %67 = tpu.matmul %65, %66, %cst_24 {dimension_numbers = #tpu.dot_dimension_numbers<[1], [0], [0], [1], [0, 0, 1, 1], [], []>} : vector<8x8xf32>, vector<8x32xf32>, vector<8x32xf32> -> vector<8x32xf32>
    %68 = arith.addf %50, %67 : vector<8x32xf32>
    %69 = vector.extract_strided_slice %5 {offsets = [0, 24], sizes = [8, 8], strides = [1, 1]} : vector<16x32xf32> to vector<8x8xf32>
    %70 = vector.extract_strided_slice %6 {offsets = [0, 24], sizes = [8, 8], strides = [1, 1]} : vector<16x32xf32> to vector<8x8xf32>
    %71 = vector.extract_strided_slice %7 {offsets = [0, 24], sizes = [8, 8], strides = [1, 1]} : vector<16x32xf32> to vector<8x8xf32>
    %cst_25 = arith.constant dense<0.000000e+00> : vector<8x8xf32>
    %72 = tpu.matmul %69, %70, %cst_25 {dimension_numbers = #tpu.dot_dimension_numbers<[1], [1], [0], [0], [0, 0, 1, 0], [], []>} : vector<8x8xf32>, vector<8x8xf32>, vector<8x8xf32> -> vector<8x8xf32>
    %73 = arith.addf %72, %13 : vector<8x8xf32>
    %cst_26 = arith.constant dense<0xFF800000> : vector<8xf32>
    %74 = vector.multi_reduction <maximumf>, %73, %cst_26 [1] : vector<8x8xf32> to vector<8xf32>
    %75 = vector.shape_cast %74 : vector<8xf32> to vector<8x1xf32>
    %76 = vector.broadcast %75 : vector<8x1xf32> to vector<8x8xf32>
    %77 = arith.subf %73, %76 : vector<8x8xf32>
    %78 = math.exp %77 : vector<8x8xf32>
    %cst_27 = arith.constant dense<0.000000e+00> : vector<8xf32>
    %79 = vector.multi_reduction <add>, %78, %cst_27 [1] : vector<8x8xf32> to vector<8xf32>
    %80 = vector.shape_cast %79 : vector<8xf32> to vector<8x1xf32>
    %81 = vector.broadcast %80 : vector<8x1xf32> to vector<8x8xf32>
    %82 = arith.divf %78, %81 : vector<8x8xf32>
    %cst_28 = arith.constant dense<0.000000e+00> : vector<8x8xf32>
    %83 = tpu.matmul %82, %71, %cst_28 {dimension_numbers = #tpu.dot_dimension_numbers<[1], [0], [0], [1], [0, 0, 1, 1], [], []>} : vector<8x8xf32>, vector<8x8xf32>, vector<8x8xf32> -> vector<8x8xf32>
    %84 = vector.extract_strided_slice %2 {offsets = [24, 0], sizes = [8, 32], strides = [1, 1]} : vector<32x32xf32> to vector<8x32xf32>
    %cst_29 = arith.constant dense<0.000000e+00> : vector<8x32xf32>
    %85 = tpu.matmul %83, %84, %cst_29 {dimension_numbers = #tpu.dot_dimension_numbers<[1], [0], [0], [1], [0, 0, 1, 1], [], []>} : vector<8x8xf32>, vector<8x32xf32>, vector<8x32xf32> -> vector<8x32xf32>
    %86 = arith.addf %68, %85 : vector<8x32xf32>
    %87 = vector.broadcast %3 : vector<1x32xf32> to vector<8x32xf32>
    %88 = arith.addf %86, %87 : vector<8x32xf32>
    %c0_30 = arith.constant 0 : index
    %c0_31 = arith.constant 0 : index
    %89 = vector.load %arg5[%c0_30, %c0_31] : memref<16x32xf32, #tpu.memory_space<vmem>>, vector<8x32xf32>
    tpu.vector_store %arg5[%c0_30, %c0_31], %88 {strides = array<i32>} : memref<16x32xf32, #tpu.memory_space<vmem>>, vector<8x32xf32>,
    %cst_32 = arith.constant 0.000000e+00 : f32
    %90 = vector.broadcast %cst_32 : f32 to vector<8x32xf32>
    %91 = vector.extract_strided_slice %5 {offsets = [8, 0], sizes = [8, 8], strides = [1, 1]} : vector<16x32xf32> to vector<8x8xf32>
    %92 = vector.extract_strided_slice %6 {offsets = [8, 0], sizes = [8, 8], strides = [1, 1]} : vector<16x32xf32> to vector<8x8xf32>
    %93 = vector.extract_strided_slice %7 {offsets = [8, 0], sizes = [8, 8], strides = [1, 1]} : vector<16x32xf32> to vector<8x8xf32>
    %cst_33 = arith.constant dense<0.000000e+00> : vector<8x8xf32>
    %94 = tpu.matmul %91, %92, %cst_33 {dimension_numbers = #tpu.dot_dimension_numbers<[1], [1], [0], [0], [0, 0, 1, 0], [], []>} : vector<8x8xf32>, vector<8x8xf32>, vector<8x8xf32> -> vector<8x8xf32>
    %95 = arith.addf %94, %13 : vector<8x8xf32>
    %cst_34 = arith.constant dense<0xFF800000> : vector<8xf32>
    %96 = vector.multi_reduction <maximumf>, %95, %cst_34 [1] : vector<8x8xf32> to vector<8xf32>
    %97 = vector.shape_cast %96 : vector<8xf32> to vector<8x1xf32>
    %98 = vector.broadcast %97 : vector<8x1xf32> to vector<8x8xf32>
    %99 = arith.subf %95, %98 : vector<8x8xf32>
    %100 = math.exp %99 : vector<8x8xf32>
    %cst_35 = arith.constant dense<0.000000e+00> : vector<8xf32>
    %101 = vector.multi_reduction <add>, %100, %cst_35 [1] : vector<8x8xf32> to vector<8xf32>
    %102 = vector.shape_cast %101 : vector<8xf32> to vector<8x1xf32>
    %103 = vector.broadcast %102 : vector<8x1xf32> to vector<8x8xf32>
    %104 = arith.divf %100, %103 : vector<8x8xf32>
    %cst_36 = arith.constant dense<0.000000e+00> : vector<8x8xf32>
    %105 = tpu.matmul %104, %93, %cst_36 {dimension_numbers = #tpu.dot_dimension_numbers<[1], [0], [0], [1], [0, 0, 1, 1], [], []>} : vector<8x8xf32>, vector<8x8xf32>, vector<8x8xf32> -> vector<8x8xf32>
    %106 = vector.extract_strided_slice %2 {offsets = [0, 0], sizes = [8, 32], strides = [1, 1]} : vector<32x32xf32> to vector<8x32xf32>
    %cst_37 = arith.constant dense<0.000000e+00> : vector<8x32xf32>
    %107 = tpu.matmul %105, %106, %cst_37 {dimension_numbers = #tpu.dot_dimension_numbers<[1], [0], [0], [1], [0, 0, 1, 1], [], []>} : vector<8x8xf32>, vector<8x32xf32>, vector<8x32xf32> -> vector<8x32xf32>
    %108 = arith.addf %90, %107 : vector<8x32xf32>
    %109 = vector.extract_strided_slice %5 {offsets = [8, 8], sizes = [8, 8], strides = [1, 1]} : vector<16x32xf32> to vector<8x8xf32>
    %110 = vector.extract_strided_slice %6 {offsets = [8, 8], sizes = [8, 8], strides = [1, 1]} : vector<16x32xf32> to vector<8x8xf32>
    %111 = vector.extract_strided_slice %7 {offsets = [8, 8], sizes = [8, 8], strides = [1, 1]} : vector<16x32xf32> to vector<8x8xf32>
    %cst_38 = arith.constant dense<0.000000e+00> : vector<8x8xf32>
    %112 = tpu.matmul %109, %110, %cst_38 {dimension_numbers = #tpu.dot_dimension_numbers<[1], [1], [0], [0], [0, 0, 1, 0], [], []>} : vector<8x8xf32>, vector<8x8xf32>, vector<8x8xf32> -> vector<8x8xf32>
    %113 = arith.addf %112, %13 : vector<8x8xf32>
    %cst_39 = arith.constant dense<0xFF800000> : vector<8xf32>
    %114 = vector.multi_reduction <maximumf>, %113, %cst_39 [1] : vector<8x8xf32> to vector<8xf32>
    %115 = vector.shape_cast %114 : vector<8xf32> to vector<8x1xf32>
    %116 = vector.broadcast %115 : vector<8x1xf32> to vector<8x8xf32>
    %117 = arith.subf %113, %116 : vector<8x8xf32>
    %118 = math.exp %117 : vector<8x8xf32>
    %cst_40 = arith.constant dense<0.000000e+00> : vector<8xf32>
    %119 = vector.multi_reduction <add>, %118, %cst_40 [1] : vector<8x8xf32> to vector<8xf32>
    %120 = vector.shape_cast %119 : vector<8xf32> to vector<8x1xf32>
    %121 = vector.broadcast %120 : vector<8x1xf32> to vector<8x8xf32>
    %122 = arith.divf %118, %121 : vector<8x8xf32>
    %cst_41 = arith.constant dense<0.000000e+00> : vector<8x8xf32>
    %123 = tpu.matmul %122, %111, %cst_41 {dimension_numbers = #tpu.dot_dimension_numbers<[1], [0], [0], [1], [0, 0, 1, 1], [], []>} : vector<8x8xf32>, vector<8x8xf32>, vector<8x8xf32> -> vector<8x8xf32>
    %124 = vector.extract_strided_slice %2 {offsets = [8, 0], sizes = [8, 32], strides = [1, 1]} : vector<32x32xf32> to vector<8x32xf32>
    %cst_42 = arith.constant dense<0.000000e+00> : vector<8x32xf32>
    %125 = tpu.matmul %123, %124, %cst_42 {dimension_numbers = #tpu.dot_dimension_numbers<[1], [0], [0], [1], [0, 0, 1, 1], [], []>} : vector<8x8xf32>, vector<8x32xf32>, vector<8x32xf32> -> vector<8x32xf32>
    %126 = arith.addf %108, %125 : vector<8x32xf32>
    %127 = vector.extract_strided_slice %5 {offsets = [8, 16], sizes = [8, 8], strides = [1, 1]} : vector<16x32xf32> to vector<8x8xf32>
    %128 = vector.extract_strided_slice %6 {offsets = [8, 16], sizes = [8, 8], strides = [1, 1]} : vector<16x32xf32> to vector<8x8xf32>
    %129 = vector.extract_strided_slice %7 {offsets = [8, 16], sizes = [8, 8], strides = [1, 1]} : vector<16x32xf32> to vector<8x8xf32>
    %cst_43 = arith.constant dense<0.000000e+00> : vector<8x8xf32>
    %130 = tpu.matmul %127, %128, %cst_43 {dimension_numbers = #tpu.dot_dimension_numbers<[1], [1], [0], [0], [0, 0, 1, 0], [], []>} : vector<8x8xf32>, vector<8x8xf32>, vector<8x8xf32> -> vector<8x8xf32>
    %131 = arith.addf %130, %13 : vector<8x8xf32>
    %cst_44 = arith.constant dense<0xFF800000> : vector<8xf32>
    %132 = vector.multi_reduction <maximumf>, %131, %cst_44 [1] : vector<8x8xf32> to vector<8xf32>
    %133 = vector.shape_cast %132 : vector<8xf32> to vector<8x1xf32>
    %134 = vector.broadcast %133 : vector<8x1xf32> to vector<8x8xf32>
    %135 = arith.subf %131, %134 : vector<8x8xf32>
    %136 = math.exp %135 : vector<8x8xf32>
    %cst_45 = arith.constant dense<0.000000e+00> : vector<8xf32>
    %137 = vector.multi_reduction <add>, %136, %cst_45 [1] : vector<8x8xf32> to vector<8xf32>
    %138 = vector.shape_cast %137 : vector<8xf32> to vector<8x1xf32>
    %139 = vector.broadcast %138 : vector<8x1xf32> to vector<8x8xf32>
    %140 = arith.divf %136, %139 : vector<8x8xf32>
    %cst_46 = arith.constant dense<0.000000e+00> : vector<8x8xf32>
    %141 = tpu.matmul %140, %129, %cst_46 {dimension_numbers = #tpu.dot_dimension_numbers<[1], [0], [0], [1], [0, 0, 1, 1], [], []>} : vector<8x8xf32>, vector<8x8xf32>, vector<8x8xf32> -> vector<8x8xf32>
    %142 = vector.extract_strided_slice %2 {offsets = [16, 0], sizes = [8, 32], strides = [1, 1]} : vector<32x32xf32> to vector<8x32xf32>
    %cst_47 = arith.constant dense<0.000000e+00> : vector<8x32xf32>
    %143 = tpu.matmul %141, %142, %cst_47 {dimension_numbers = #tpu.dot_dimension_numbers<[1], [0], [0], [1], [0, 0, 1, 1], [], []>} : vector<8x8xf32>, vector<8x32xf32>, vector<8x32xf32> -> vector<8x32xf32>
    %144 = arith.addf %126, %143 : vector<8x32xf32>
    %145 = vector.extract_strided_slice %5 {offsets = [8, 24], sizes = [8, 8], strides = [1, 1]} : vector<16x32xf32> to vector<8x8xf32>
    %146 = vector.extract_strided_slice %6 {offsets = [8, 24], sizes = [8, 8], strides = [1, 1]} : vector<16x32xf32> to vector<8x8xf32>
    %147 = vector.extract_strided_slice %7 {offsets = [8, 24], sizes = [8, 8], strides = [1, 1]} : vector<16x32xf32> to vector<8x8xf32>
    %cst_48 = arith.constant dense<0.000000e+00> : vector<8x8xf32>
    %148 = tpu.matmul %145, %146, %cst_48 {dimension_numbers = #tpu.dot_dimension_numbers<[1], [1], [0], [0], [0, 0, 1, 0], [], []>} : vector<8x8xf32>, vector<8x8xf32>, vector<8x8xf32> -> vector<8x8xf32>
    %149 = arith.addf %148, %13 : vector<8x8xf32>
    %cst_49 = arith.constant dense<0xFF800000> : vector<8xf32>
    %150 = vector.multi_reduction <maximumf>, %149, %cst_49 [1] : vector<8x8xf32> to vector<8xf32>
    %151 = vector.shape_cast %150 : vector<8xf32> to vector<8x1xf32>
    %152 = vector.broadcast %151 : vector<8x1xf32> to vector<8x8xf32>
    %153 = arith.subf %149, %152 : vector<8x8xf32>
    %154 = math.exp %153 : vector<8x8xf32>
    %cst_50 = arith.constant dense<0.000000e+00> : vector<8xf32>
    %155 = vector.multi_reduction <add>, %154, %cst_50 [1] : vector<8x8xf32> to vector<8xf32>
    %156 = vector.shape_cast %155 : vector<8xf32> to vector<8x1xf32>
    %157 = vector.broadcast %156 : vector<8x1xf32> to vector<8x8xf32>
    %158 = arith.divf %154, %157 : vector<8x8xf32>
    %cst_51 = arith.constant dense<0.000000e+00> : vector<8x8xf32>
    %159 = tpu.matmul %158, %147, %cst_51 {dimension_numbers = #tpu.dot_dimension_numbers<[1], [0], [0], [1], [0, 0, 1, 1], [], []>} : vector<8x8xf32>, vector<8x8xf32>, vector<8x8xf32> -> vector<8x8xf32>
    %160 = vector.extract_strided_slice %2 {offsets = [24, 0], sizes = [8, 32], strides = [1, 1]} : vector<32x32xf32> to vector<8x32xf32>
    %cst_52 = arith.constant dense<0.000000e+00> : vector<8x32xf32>
    %161 = tpu.matmul %159, %160, %cst_52 {dimension_numbers = #tpu.dot_dimension_numbers<[1], [0], [0], [1], [0, 0, 1, 1], [], []>} : vector<8x8xf32>, vector<8x32xf32>, vector<8x32xf32> -> vector<8x32xf32>
    %162 = arith.addf %144, %161 : vector<8x32xf32>
    %163 = vector.broadcast %3 : vector<1x32xf32> to vector<8x32xf32>
    %164 = arith.addf %162, %163 : vector<8x32xf32>
    %c8 = arith.constant 8 : index
    %c0_53 = arith.constant 0 : index
    %165 = vector.load %arg5[%c8, %c0_53] : memref<16x32xf32, #tpu.memory_space<vmem>>, vector<8x32xf32>
    tpu.vector_store %arg5[%c8, %c0_53], %164 {strides = array<i32>} : memref<16x32xf32, #tpu.memory_space<vmem>>, vector<8x32xf32>,
    return
  }
  func.func @transform_0(%arg0: i32) -> (i32, i32) {
    %c0_i32 = arith.constant 0 : i32
    %c0_i32_0 = arith.constant 0 : i32
    %c0_i32_1 = arith.constant 0 : i32
    return %c0_i32, %c0_i32_0 : i32, i32
  }
  func.func @transform_1(%arg0: i32) -> (i32, i32) {
    %c0_i32 = arith.constant 0 : i32
    %c0_i32_0 = arith.constant 0 : i32
    %c0_i32_1 = arith.constant 0 : i32
    return %c0_i32, %c0_i32_0 : i32, i32
  }
  func.func @transform_2(%arg0: i32) -> (i32, i32) {
    %c0_i32 = arith.constant 0 : i32
    %c0_i32_0 = arith.constant 0 : i32
    %c0_i32_1 = arith.constant 0 : i32
    return %c0_i32, %c0_i32_0 : i32, i32
  }
  func.func @transform_3(%arg0: i32) -> (i32, i32) {
    %c0_i32 = arith.constant 0 : i32
    %c0_i32_0 = arith.constant 0 : i32
    %c0_i32_1 = arith.constant 0 : i32
    return %c0_i32, %c0_i32_0 : i32, i32
  }
  func.func @transform_4(%arg0: i32) -> (i32, i32) {
    %c0_i32 = arith.constant 0 : i32
    %c0_i32_0 = arith.constant 0 : i32
    %c0_i32_1 = arith.constant 0 : i32
    return %c0_i32, %c0_i32_0 : i32, i32
  }
}

</mosaic_0001>

<bundles_post_ra>
// kernel: multi_head_attention.1
= control target key start
LH: loop header
LB: loop body
LE: loop exit
PB: predicated region body
PF: predicated region fallthrough
CT: control target
= control target key end

     0   :  { %vm29_vm0 = vcmask 261120   ;;  %s2645_s0 = inlined_call_operand.vmem [shape: f32[16,32], index: 0, kind: input, shape index: {}]   ;;  %s2646_s1 = inlined_call_operand.vmem [shape: f32[32,96], index: 1, kind: input, shape index: {}]   ;;  %s2647_s2 = inlined_call_operand.vmem [shape: f32[32,32], index: 2, kind: input, shape index: {}]   ;;  %s2648_s3 = inlined_call_operand.vmem [shape: f32[1,32], index: 3, kind: input, shape index: {}]   ;;  %s2649_s4 = inlined_call_operand.hbm [shape: f32[16,32], index: 4, kind: output, shape index: {}]  }
   0x1   :  { %v20_v0 = vld [vmem:[%s2646_s1] sm:$0xff]  ;;  %v21_v1 = vld [vmem:[%s2646_s1 + $0x8] sm:$0xff]  ;;  %v22_v2 = vld [vmem:[%s2646_s1 + $0x10] sm:$0xff] }
   0x2   :  { %v2270_v3 = vpack.c.bf16 %v21_v1, %v20_v0  ;;  %v23_v4 = vld [vmem:[%s2646_s1 + $0x18] sm:$0xff]  ;;  %v18_v5 = vld [vmem:[%s2645_s0] sm:$0xff] }
   0x3   :  { %v2274_v6 = vpack.c.bf16 %v23_v4, %v22_v2  ;;  %2147 = vmatprep.mubr.msk.f32.mxu0 %vm29_vm0, %v18_v5 }
   0x4   :  { %9 = vsyncpa [#allocation3], 0  ;;  %2271 = vmatprep.subr.bf16.mxu0 %v2270_v3  ;;  %v19_v7 = vld [vmem:[%s2645_s0 + $0x8] sm:$0xff]  ;;  %v2351_v8 = vmov 0.0   ;;  %vm2352_vm1 = vmmov 0   ;;  %s2353_s1 = smov 120   ;;  %v111_v14 = vlaneseq }
   0x5   :  { %2273 = vmatpush3.bf16.msra.mxu0 %v2270_v3  ;;  %2150 = vmatprep.subr.mxu1 %v2351_v8  ;;  %s2354_s0 = smov 96   ;;  %s2355_s27 = smov 88   ;;  %vm120_vm2 = vcmask 64512   ;;  %v2356_v17 = vmov -1e+30   ;;  %v2459_v37 = vld [vmem:[%s2647_s2 + $0x8] sm:$0xff] }
   0x6   :  { %2275 = vmatprep.subr.bf16.mxu0 %v2274_v6  ;;  %2152 = vmatprep.mubr.msk.f32.mxu1 %vm2352_vm1, %v2351_v8  ;;  %v112_v15 = vshrl.u32 %v111_v14, 7  ;;  %v114_v16 = vand.u32 127, %v111_v14  ;;  %s2357_s28 = smov 56   ;;  %s2358_s29 = smov 64   ;;  %v2474_v46 = vld [vmem:[%s2647_s2] sm:$0xff] }
   0x7   :  { %s2359_s30 = smov 80   ;;  %s2360_s5 = smov 112  }
   0x8   :  { %vm115_vm3 = vcmp.ge.s32.totalorder %v112_v15, %v114_v16  ;;  %s2361_s10 = smov 72   ;;  %s2362_s11 = smov 104  }
   0x9   :  { %2277 = vmatpush3.bf16.msra.mxu0 %v2274_v6  ;;  %v2440_v18 = vsel %vm115_vm3, 0.0, %v2356_v17  ;;  %s2363_s12 = smov 48   ;;  %s2364_s15 = smov 40  }
   0xa   :  { %2160 = vmatprep.subr.mxu0 %v2351_v8 }
   0xc   :  { %2148 = vmatmul.mubr.msk.f32.vlgmr.msra.gmra.mrb[0].mxu0 %vm29_vm0, %v19_v7 }
   0xd   :  { %2162 = vmatprep.mubr.msk.f32.mxu0 %vm2352_vm1, %v2351_v8 }
  0xdf   :  { %v2419_v9 = vpop.f32.mrb[0].mxu0 }
  0xe0   :  { %v2421_v10 = vpop.f32.mrb[1].mxu0 }
  0xe1   :  { %282 = vrot.lane.b32.xlu1 %v2421_v10, %s2353_s1  ;;  %118 = vrot.lane.b32.xlu0 %v2421_v10, %s2354_s0 }
  0xe5   :  { %284 = vrot.lane.b32.xlu0 %v2421_v10, %s2355_s27 }
 0x153   :  { %v119_v11 = vpop.permute.xlu0 %118  ;;  %v283_v13 = vpop.permute.xlu1 %282 }
 0x154   :  { %2151 = vmatpush3.xpose.msk.msra.mxu1 %vm120_vm2, %v119_v11 }
 0x155   :  { %2155 = vmatprep.subr.mxu1 %v2351_v8 }
 0x157   :  { %2153 = vmatmul.mubr.msk.f32.vlgmr.msra.gmra.mrb[0].mxu1 %vm120_vm2, %v2421_v10  ;;  %v285_v12 = vpop.permute.xlu0 %284 }
 0x158   :  { %2161 = vmatpush3.xpose.msk.msra.mxu0 %vm120_vm2, %v285_v12  ;;  %2157 = vmatprep.mubr.msk.f32.mxu1 %vm2352_vm1, %v2351_v8  ;;  %v2514_v12 = vld [vmem:[%s2647_s2 + $0x10] sm:$0xff] }
 0x159   :  { %2170 = vmatprep.subr.mxu0 %v2351_v8 }
 0x15b   :  { %2163 = vmatmul.mubr.msk.f32.vlgmr.msra.gmra.mrb[2].mxu0 %vm120_vm2, %v283_v13 }
 0x15c   :  { %2172 = vmatprep.mubr.msk.f32.mxu0 %vm2352_vm1, %v2351_v8  ;;  %2171 = vmatpush3.msra.mxu0 %v2459_v37 }
 0x15d   :  { %2180 = vmatprep.subr.mxu0 %v2351_v8 }
 0x22a   :  { %v191_v19 = vpop.f32.mrb[0].mxu1 }
 0x22b   :  { %v192_v20 = vadd.f32 %v191_v19, %v2440_v18  ;;  %v2154_v21 = vpop.f32.mrb[1].mxu1 }
 0x22d   :  { %v195_v22 = vsel %vm120_vm2, %v192_v20, -inf }
 0x22e   :  { %196 = vmax.xlane.f32.xlu1 %v195_v22  ;;  %v356_v23 = vpop.f32.mrb[2].mxu0 }
 0x22f   :  { %v357_v24 = vadd.f32 %v356_v23, %v2440_v18  ;;  %v2164_v25 = vpop.f32.mrb[3].mxu0 }
 0x231   :  { %v360_v26 = vsel %vm120_vm2, %v357_v24, -inf }
 0x232   :  { %361 = vmax.xlane.f32.xlu0 %v360_v26 }
 0x2bb   :  { %v197_v27 = vpop.xlane.xlu1 %196 }
 0x2bc   :  { %v198_v28 = vsub.f32 %v192_v20, %v197_v27 }
 0x2be   :  { %v199_v29 = vmul.f32 1.442695, %v198_v28 }
 0x2bf   :  { %v362_v30 = vpop.xlane.xlu0 %361 }
 0x2c0   :  { %2295 = vpow2.f32 %v199_v29  ;;  %v363_v31 = vsub.f32 %v357_v24, %v362_v30 }
 0x2c2   :  { %v364_v32 = vmul.f32 1.442695, %v363_v31 }
 0x2c4   :  { %2297 = vpow2.f32 %v364_v32 }
 0x2ca   :  { %v2296_v33 = vpop.eup %2295 }
 0x2cb   :  { %v201_v34 = vsel %vm120_vm2, %v2296_v33, 0.0 }
 0x2cc   :  { %202 = vadd.xlane.f32.xlu0 %v201_v34  ;;  %v2551_v34 = vld [vmem:[%s2647_s2 + $0x18] sm:$0xff] }
 0x2ce   :  { %v2298_v35 = vpop.eup %2297 }
 0x2cf   :  { %v366_v36 = vsel %vm120_vm2, %v2298_v35, 0.0 }
 0x2d0   :  { %367 = vadd.xlane.f32.xlu1 %v366_v36 }
 0x2e1   :  { %371 = vrot.lane.b32.xlu1 %v2421_v10, %s2357_s28 }
 0x2e2   :  { %206 = vrot.lane.b32.xlu0 %v2421_v10, %s2358_s29 }
 0x2e5   :  { %595 = vrot.lane.b32.xlu1 %v2421_v10, %s2359_s30 }
 0x2e6   :  { %593 = vrot.lane.b32.xlu0 %v2421_v10, %s2360_s5 }
 0x359   :  { %v203_v38 = vpop.xlane.xlu0 %202 }
 0x35a   :  { %2299 = vrcp.f32 %v203_v38 }
 0x35d   :  { %v368_v39 = vpop.xlane.xlu1 %367  ;;  %v207_v40 = vpop.permute.xlu0 %206 }
 0x35e   :  { %2301 = vrcp.f32 %v368_v39  ;;  %2156 = vmatpush3.msra.mxu1 %v207_v40 }
 0x35f   :  { %2165 = vmatprep.subr.mxu1 %v2351_v8 }
 0x361   :  { %v372_v43 = vpop.permute.xlu1 %371  ;;  %v594_v52 = vpop.permute.xlu0 %593 }
 0x364   :  { %v2300_v41 = vpop.eup %2299 }
 0x365   :  { %v205_v42 = vmul.f32 %v2300_v41, %v2296_v33  ;;  %v596_v50 = vpop.permute.xlu1 %595 }
 0x367   :  { %2158 = vmatmul.mubr.msk.f32.vlgmr.msra.gmra.mrb[2].mxu1 %vm120_vm2, %v205_v42 }
 0x368   :  { %v2302_v44 = vpop.eup %2301  ;;  %2166 = vmatpush3.msra.mxu1 %v372_v43  ;;  %2167 = vmatprep.mubr.msk.f32.mxu1 %vm2352_vm1, %v2351_v8 }
 0x369   :  { %v370_v45 = vmul.f32 %v2302_v44, %v2298_v35  ;;  %2175 = vmatprep.subr.mxu1 %v2351_v8 }
 0x36b   :  { %2168 = vmatmul.mubr.msk.f32.vlgmr.msra.gmra.mrb[4].mxu1 %vm120_vm2, %v370_v45 }
 0x36c   :  { %2177 = vmatprep.mubr.msk.f32.mxu1 %vm2352_vm1, %v2351_v8  ;;  %2176 = vmatpush3.msra.mxu1 %v2474_v46 }
 0x36d   :  { %2185 = vmatprep.subr.mxu1 %v2351_v8 }
 0x43a   :  { %v278_v47 = vpop.f32.mrb[2].mxu1 }
 0x43b   :  { %v2159_v48 = vpop.f32.mrb[3].mxu1  ;;  %2178 = vmatmul.mubr.msk.f32.vlgmr.msra.gmra.mrb[6].mxu1 %vm120_vm2, %v278_v47 }
 0x43c   :  { %2187 = vmatprep.mubr.msk.f32.mxu1 %vm2352_vm1, %v2351_v8 }
 0x43e   :  { %v443_v49 = vpop.f32.mrb[4].mxu1 }
 0x43f   :  { %v2169_v51 = vpop.f32.mrb[5].mxu1  ;;  %2173 = vmatmul.mubr.msk.f32.vlgmr.msra.gmra.mrb[4].mxu0 %vm120_vm2, %v443_v49 }
 0x440   :  { %2181 = vmatpush3.xpose.msk.msra.mxu0 %vm120_vm2, %v596_v50  ;;  %2182 = vmatprep.mubr.msk.f32.mxu0 %vm2352_vm1, %v2351_v8 }
 0x441   :  { %2190 = vmatprep.subr.mxu0 %v2351_v8 }
 0x443   :  { %2183 = vmatmul.mubr.msk.f32.vlgmr.msra.gmra.mrb[6].mxu0 %vm120_vm2, %v594_v52 }
 0x444   :  { %2192 = vmatprep.mubr.msk.f32.mxu0 %vm2352_vm1, %v2351_v8  ;;  %2191 = vmatpush3.msra.mxu0 %v2514_v12 }
 0x445   :  { %2200 = vmatprep.subr.mxu0 %v2351_v8 }
 0x50e   :  { %v589_v53 = vpop.f32.mrb[6].mxu1 }
 0x50f   :  { %v2179_v54 = vpop.f32.mrb[7].mxu1 }
 0x512   :  { %v516_v55 = vpop.f32.mrb[4].mxu0 }
 0x513   :  { %v2489_v56 = vadd.f32 %v589_v53, %v516_v55  ;;  %v2174_v57 = vpop.f32.mrb[5].mxu0 }
 0x514   :  { %v2576_v57 = vld [vmem:[%s2648_s3] ss:$0 sm:$0xff]  ;;  %s2365_s3 = smov [#allocation2]  }
 0x515   :  { %s2039_s19 = sshll.u32 %s2365_s3, 4  ;;  %s2040_s19 = int_to_ptr.vmem [resolvable:$true] %s2039_s19 }
 0x516   :  { %v667_v58 = vpop.f32.mrb[6].mxu0  ;;  %s2327_s20 = scalar_lea.vmem %s2040_s19, 256  ;;  %p2332_p1 = scmp.lt.s32.totalorder %s2040_s19, %s2040_s19 }
 0x517   :  { %v668_v59 = vadd.f32 %v667_v58, %v2440_v18  ;;  %v2184_v60 = vpop.f32.mrb[7].mxu0  ;;  %p2328_p0 = scmp.ne.s32.totalorder %s2040_s19, %s2327_s20  ;;  %p2333_p2 = scmp.lt.s32.totalorder %s2327_s20, %s2327_s20 }
 0x519   :  { %v671_v61 = vsel %vm120_vm2, %v668_v59, -inf  ;;  %p2334_p3 = por %p2333_p2, %p2332_p1 }
 0x51a   :  { %672 = vmax.xlane.f32.xlu1 %v671_v61 }
 0x51b   :  { %p2335_p4 = pnand %p2334_p3, %p2328_p0 }
 0x52b   :  { %834 = vrot.lane.b32.xlu1 %v2421_v10, %s2361_s10 }
 0x52f   :  { %832 = vrot.lane.b32.xlu1 %v2421_v10, %s2362_s11 }
 0x533   :  { %1080 = vrot.lane.b32.xlu1 %v2419_v9, %s2354_s0 }
 0x5a7   :  { %v673_v62 = vpop.xlane.xlu1 %672 }
 0x5a8   :  { %v674_v63 = vsub.f32 %v668_v59, %v673_v62 }
 0x5aa   :  { %v675_v0 = vmul.f32 1.442695, %v674_v63 }
 0x5ab   :  { %v835_v6 = vpop.permute.xlu1 %834 }
 0x5ac   :  { %2303 = vpow2.f32 %v675_v0 }
 0x5af   :  { %v833_v11 = vpop.permute.xlu1 %832 }
 0x5b3   :  { %v1081_v28 = vpop.permute.xlu1 %1080 }
 0x5b6   :  { %v2304_v1 = vpop.eup %2303 }
 0x5b7   :  { %v677_v2 = vsel %vm120_vm2, %v2304_v1, 0.0 }
 0x5b8   :  { %678 = vadd.xlane.f32.xlu0 %v677_v2 }
 0x5ce   :  { %682 = vrot.lane.b32.xlu0 %v2421_v10, %s2363_s12 }
 0x645   :  { %v679_v3 = vpop.xlane.xlu0 %678 }
 0x646   :  { %2305 = vrcp.f32 %v679_v3 }
 0x649   :  { %v683_v4 = vpop.permute.xlu0 %682 }
 0x64a   :  { %2186 = vmatpush3.msra.mxu1 %v683_v4 }
 0x64b   :  { %2195 = vmatprep.subr.mxu1 %v2351_v8 }
 0x650   :  { %v2306_v5 = vpop.eup %2305 }
 0x651   :  { %v681_v7 = vmul.f32 %v2306_v5, %v2304_v1 }
 0x653   :  { %2188 = vmatmul.mubr.msk.f32.vlgmr.msra.gmra.mrb[8].mxu1 %vm120_vm2, %v681_v7 }
 0x654   :  { %2196 = vmatpush3.xpose.msk.msra.mxu1 %vm120_vm2, %v835_v6  ;;  %2197 = vmatprep.mubr.msk.f32.mxu1 %vm2352_vm1, %v2351_v8 }
 0x655   :  { %2205 = vmatprep.subr.mxu1 %v2351_v8 }
 0x657   :  { %2198 = vmatmul.mubr.msk.f32.vlgmr.msra.gmra.mrb[10].mxu1 %vm120_vm2, %v833_v11 }
 0x658   :  { %2207 = vmatprep.mubr.msk.f32.mxu1 %vm2352_vm1, %v2351_v8  ;;  %2206 = vmatpush3.msra.mxu1 %v2551_v34 }
 0x659   :  { %2215 = vmatprep.subr.mxu1 %v2351_v8 }
 0x726   :  { %v754_v13 = vpop.f32.mrb[8].mxu1 }
 0x727   :  { %v2189_v14 = vpop.f32.mrb[9].mxu1  ;;  %2193 = vmatmul.mubr.msk.f32.vlgmr.msra.gmra.mrb[8].mxu0 %vm120_vm2, %v754_v13 }
 0x728   :  { %2202 = vmatprep.mubr.msk.f32.mxu0 %vm2352_vm1, %v2351_v8 }
 0x72a   :  { %v906_v15 = vpop.f32.mrb[10].mxu1 }
 0x72b   :  { %v907_v16 = vadd.f32 %v906_v15, %v2440_v18  ;;  %v2199_v17 = vpop.f32.mrb[11].mxu1 }
 0x72d   :  { %v910_v19 = vsel %vm120_vm2, %v907_v16, -inf }
 0x72e   :  { %911 = vmax.xlane.f32.xlu0 %v910_v19 }
 0x744   :  { %921 = vrot.lane.b32.xlu0 %v2421_v10, %s2364_s15 }
 0x748   :  { %1245 = vrot.lane.b32.xlu0 %v2419_v9, %s2355_s27 }
 0x7bb   :  { %v912_v20 = vpop.xlane.xlu0 %911 }
 0x7bc   :  { %v913_v21 = vsub.f32 %v907_v16, %v912_v20 }
 0x7be   :  { %v914_v22 = vmul.f32 1.442695, %v913_v21 }
 0x7bf   :  { %v922_v23 = vpop.permute.xlu0 %921 }
 0x7c0   :  { %2307 = vpow2.f32 %v914_v22  ;;  %2201 = vmatpush3.msra.mxu0 %v922_v23 }
 0x7c1   :  { %2210 = vmatprep.subr.mxu0 %v2351_v8 }
 0x7c3   :  { %v1246_v32 = vpop.permute.xlu0 %1245 }
 0x7ca   :  { %v2308_v24 = vpop.eup %2307 }
 0x7cb   :  { %v916_v25 = vsel %vm120_vm2, %v2308_v24, 0.0 }
 0x7cc   :  { %917 = vadd.xlane.f32.xlu1 %v916_v25 }
 0x7dd   :  { %1243 = vrot.lane.b32.xlu1 %v2419_v9, %s2353_s1 }
 0x7fa   :  { %v827_v26 = vpop.f32.mrb[8].mxu0 }
 0x7fb   :  { %v831_v10 = vadd.f32 %v827_v26, %v2489_v56  ;;  %v2194_v27 = vpop.f32.mrb[9].mxu0 }
 0x859   :  { %v918_v29 = vpop.xlane.xlu1 %917 }
 0x85a   :  { %2309 = vrcp.f32 %v918_v29 }
 0x85d   :  { %v1244_v33 = vpop.permute.xlu1 %1243 }
 0x864   :  { %v2310_v30 = vpop.eup %2309 }
 0x865   :  { %v920_v31 = vmul.f32 %v2310_v30, %v2308_v24 }
 0x867   :  { %2203 = vmatmul.mubr.msk.f32.vlgmr.msra.gmra.mrb[10].mxu0 %vm120_vm2, %v920_v31 }
 0x868   :  { %2211 = vmatpush3.xpose.msk.msra.mxu0 %vm120_vm2, %v1081_v28  ;;  %2212 = vmatprep.mubr.msk.f32.mxu0 %vm2352_vm1, %v2351_v8 }
 0x869   :  { %2220 = vmatprep.subr.mxu0 %v2351_v8 }
 0x86b   :  { %2213 = vmatmul.mubr.msk.f32.vlgmr.msra.gmra.mrb[12].mxu0 %vm120_vm2, %v2419_v9 }
 0x86c   :  { %2221 = vmatpush3.xpose.msk.msra.mxu0 %vm120_vm2, %v1246_v32  ;;  %2222 = vmatprep.mubr.msk.f32.mxu0 %vm2352_vm1, %v2351_v8 }
 0x86d   :  { %2230 = vmatprep.subr.mxu0 %v2351_v8 }
 0x86f   :  { %2223 = vmatmul.mubr.msk.f32.vlgmr.msra.gmra.mrb[14].mxu0 %vm120_vm2, %v1244_v33 }
 0x870   :  { %2231 = vmatpush3.msra.mxu0 %v2459_v37  ;;  %2232 = vmatprep.mubr.msk.f32.mxu0 %vm2352_vm1, %v2351_v8 }
 0x871   :  { %2240 = vmatprep.subr.mxu0 %v2351_v8 }
 0x93a   :  { %v993_v35 = vpop.f32.mrb[10].mxu0 }
 0x93b   :  { %v2204_v36 = vpop.f32.mrb[11].mxu0  ;;  %2208 = vmatmul.mubr.msk.f32.vlgmr.msra.gmra.mrb[12].mxu1 %vm120_vm2, %v993_v35 }
 0x93c   :  { %2217 = vmatprep.mubr.msk.f32.mxu1 %vm2352_vm1, %v2351_v8 }
 0x93e   :  { %v1152_v37 = vpop.f32.mrb[12].mxu0 }
 0x93f   :  { %v1153_v38 = vadd.f32 %v1152_v37, %v2440_v18  ;;  %v2214_v39 = vpop.f32.mrb[13].mxu0 }
 0x941   :  { %v1156_v40 = vsel %vm120_vm2, %v1153_v38, -inf }
 0x942   :  { %1157 = vmax.xlane.f32.xlu0 %v1156_v40  ;;  %v1317_v41 = vpop.f32.mrb[14].mxu0 }
 0x943   :  { %v1318_v42 = vadd.f32 %v1317_v41, %v2440_v18  ;;  %v2224_v43 = vpop.f32.mrb[15].mxu0 }
 0x945   :  { %v1321_v44 = vsel %vm120_vm2, %v1318_v42, -inf }
 0x946   :  { %1322 = vmax.xlane.f32.xlu1 %v1321_v44 }
 0x957   :  { %1167 = vrot.lane.b32.xlu1 %v2419_v9, %s2358_s29 }
 0x95b   :  { %1556 = vrot.lane.b32.xlu1 %v2419_v9, %s2359_s30 }
 0x95f   :  { %1554 = vrot.lane.b32.xlu1 %v2419_v9, %s2360_s5 }
 0x9cf   :  { %v1158_v45 = vpop.xlane.xlu0 %1157 }
 0x9d0   :  { %v1159_v47 = vsub.f32 %v1153_v38, %v1158_v45 }
 0x9d2   :  { %v1160_v48 = vmul.f32 1.442695, %v1159_v47 }
 0x9d3   :  { %v1323_v49 = vpop.xlane.xlu1 %1322 }
 0x9d4   :  { %2311 = vpow2.f32 %v1160_v48  ;;  %v1324_v50 = vsub.f32 %v1318_v42, %v1323_v49 }
 0x9d6   :  { %v1325_v51 = vmul.f32 1.442695, %v1324_v50 }
 0x9d7   :  { %v1168_v52 = vpop.permute.xlu1 %1167 }
 0x9d8   :  { %2313 = vpow2.f32 %v1325_v51  ;;  %2216 = vmatpush3.msra.mxu1 %v1168_v52 }
 0x9d9   :  { %2225 = vmatprep.subr.mxu1 %v2351_v8 }
 0x9db   :  { %v1557_v7 = vpop.permute.xlu1 %1556 }
 0x9de   :  { %v2312_v53 = vpop.eup %2311 }
 0x9df   :  { %v1162_v54 = vsel %vm120_vm2, %v2312_v53, 0.0 }
 0x9e0   :  { %1163 = vadd.xlane.f32.xlu0 %v1162_v54 }
 0x9e2   :  { %v2314_v55 = vpop.eup %2313 }
 0x9e3   :  { %v1327_v56 = vsel %vm120_vm2, %v2314_v55, 0.0 }
 0x9e4   :  { %1328 = vadd.xlane.f32.xlu0 %v1327_v56 }
 0x9fa   :  { %1332 = vrot.lane.b32.xlu0 %v2419_v9, %s2357_s28 }
 0xa0e   :  { %v1066_v58 = vpop.f32.mrb[12].mxu1 }
 0xa0f   :  { %v1070_v59 = vadd.f32 %v1066_v58, %v831_v10  ;;  %v2209_v60 = vpop.f32.mrb[13].mxu1 }
 0xa11   :  { %v1077_v61 = vadd.f32 %v2576_v57, %v1070_v59 }
 0xa13   :  { %1078 = vst.msk [vmem:[#allocation2] sm:$0xff] %vm29_vm0, %v1077_v61 }
 0xa6d   :  { %v1164_v62 = vpop.xlane.xlu0 %1163 }
 0xa6e   :  { %2315 = vrcp.f32 %v1164_v62 }
 0xa71   :  { %v1329_v63 = vpop.xlane.xlu0 %1328 }
 0xa72   :  { %2317 = vrcp.f32 %v1329_v63 }
 0xa75   :  { %v1333_v2 = vpop.permute.xlu0 %1332 }
 0xa78   :  { %v2316_v0 = vpop.eup %2315 }
 0xa79   :  { %v1166_v1 = vmul.f32 %v2316_v0, %v2312_v53 }
 0xa7b   :  { %2218 = vmatmul.mubr.msk.f32.vlgmr.msra.gmra.mrb[14].mxu1 %vm120_vm2, %v1166_v1 }
 0xa7c   :  { %v2318_v3 = vpop.eup %2317  ;;  %2226 = vmatpush3.msra.mxu1 %v1333_v2  ;;  %2227 = vmatprep.mubr.msk.f32.mxu1 %vm2352_vm1, %v2351_v8 }
 0xa7d   :  { %v1331_v4 = vmul.f32 %v2318_v3, %v2314_v55  ;;  %2235 = vmatprep.subr.mxu1 %v2351_v8 }
 0xa7f   :  { %2228 = vmatmul.mubr.msk.f32.vlgmr.msra.gmra.mrb[16].mxu1 %vm120_vm2, %v1331_v4 }
 0xa80   :  { %2236 = vmatpush3.msra.mxu1 %v2474_v46  ;;  %2237 = vmatprep.mubr.msk.f32.mxu1 %vm2352_vm1, %v2351_v8  ;;  %v1555_v46 = vpop.permute.xlu1 %1554 }
 0xa81   :  { %2245 = vmatprep.subr.mxu1 %v2351_v8 }
 0xb4e   :  { %v1239_v5 = vpop.f32.mrb[14].mxu1 }
 0xb4f   :  { %v2219_v6 = vpop.f32.mrb[15].mxu1  ;;  %2238 = vmatmul.mubr.msk.f32.vlgmr.msra.gmra.mrb[18].mxu1 %vm120_vm2, %v1239_v5 }
 0xb50   :  { %2247 = vmatprep.mubr.msk.f32.mxu1 %vm2352_vm1, %v2351_v8 }
 0xb52   :  { %v1404_v11 = vpop.f32.mrb[16].mxu1 }
 0xb53   :  { %v2229_v13 = vpop.f32.mrb[17].mxu1  ;;  %2233 = vmatmul.mubr.msk.f32.vlgmr.msra.gmra.mrb[16].mxu0 %vm120_vm2, %v1404_v11 }
 0xb54   :  { %2241 = vmatpush3.xpose.msk.msra.mxu0 %vm120_vm2, %v1557_v7  ;;  %2242 = vmatprep.mubr.msk.f32.mxu0 %vm2352_vm1, %v2351_v8 }
 0xb55   :  { %2250 = vmatprep.subr.mxu0 %v2351_v8 }
 0xb57   :  { %2243 = vmatmul.mubr.msk.f32.vlgmr.msra.gmra.mrb[18].mxu0 %vm120_vm2, %v1555_v46 }
 0xb58   :  { %2251 = vmatpush3.msra.mxu0 %v2514_v12  ;;  %2252 = vmatprep.mubr.msk.f32.mxu0 %vm2352_vm1, %v2351_v8 }
 0xb59   :  { %2260 = vmatprep.subr.mxu0 %v2351_v8 }
 0xc22   :  { %v1550_v14 = vpop.f32.mrb[18].mxu1 }
 0xc23   :  { %v2239_v15 = vpop.f32.mrb[19].mxu1 }
 0xc26   :  { %v1477_v16 = vpop.f32.mrb[16].mxu0 }
 0xc27   :  { %v1551_v17 = vadd.f32 %v1550_v14, %v1477_v16  ;;  %v2234_v19 = vpop.f32.mrb[17].mxu0 }
 0xc2a   :  { %v1628_v20 = vpop.f32.mrb[18].mxu0 }
 0xc2b   :  { %v1629_v21 = vadd.f32 %v1628_v20, %v2440_v18  ;;  %v2244_v22 = vpop.f32.mrb[19].mxu0 }
 0xc2d   :  { %v1632_v23 = vsel %vm120_vm2, %v1629_v21, -inf }
 0xc2e   :  { %1633 = vmax.xlane.f32.xlu0 %v1632_v23 }
 0xc44   :  { %1643 = vrot.lane.b32.xlu0 %v2419_v9, %s2363_s12 }
 0xc48   :  { %1793 = vrot.lane.b32.xlu0 %v2419_v9, %s2362_s11 }
 0xcbb   :  { %v1634_v12 = vpop.xlane.xlu0 %1633 }
 0xcbc   :  { %v1635_v24 = vsub.f32 %v1629_v21, %v1634_v12 }
 0xcbe   :  { %v1636_v25 = vmul.f32 1.442695, %v1635_v24 }
 0xcbf   :  { %v1644_v26 = vpop.permute.xlu0 %1643 }
 0xcc0   :  { %2319 = vpow2.f32 %v1636_v25  ;;  %2246 = vmatpush3.msra.mxu1 %v1644_v26 }
 0xcc1   :  { %2255 = vmatprep.subr.mxu1 %v2351_v8 }
 0xcc3   :  { %v1794_v32 = vpop.permute.xlu0 %1793 }
 0xcca   :  { %v2320_v10 = vpop.eup %2319 }
 0xccb   :  { %v1638_v27 = vsel %vm120_vm2, %v2320_v10, 0.0 }
 0xccc   :  { %1639 = vadd.xlane.f32.xlu1 %v1638_v27 }
 0xcdd   :  { %1795 = vrot.lane.b32.xlu1 %v2419_v9, %s2361_s10 }
 0xd59   :  { %v1640_v28 = vpop.xlane.xlu1 %1639 }
 0xd5a   :  { %2321 = vrcp.f32 %v1640_v28 }
 0xd5d   :  { %v1796_v31 = vpop.permute.xlu1 %1795 }
 0xd64   :  { %v2322_v29 = vpop.eup %2321 }
 0xd65   :  { %v1642_v30 = vmul.f32 %v2322_v29, %v2320_v10 }
 0xd67   :  { %2248 = vmatmul.mubr.msk.f32.vlgmr.msra.gmra.mrb[20].mxu1 %vm120_vm2, %v1642_v30 }
 0xd68   :  { %2256 = vmatpush3.xpose.msk.msra.mxu1 %vm120_vm2, %v1796_v31  ;;  %2257 = vmatprep.mubr.msk.f32.mxu1 %vm2352_vm1, %v2351_v8 }
 0xd69   :  { %2265 = vmatprep.subr.mxu1 %v2351_v8 }
 0xd6b   :  { %2258 = vmatmul.mubr.msk.f32.vlgmr.msra.gmra.mrb[22].mxu1 %vm120_vm2, %v1794_v32 }
 0xd6c   :  { %2266 = vmatpush3.msra.mxu1 %v2551_v34  ;;  %2267 = vmatprep.mubr.msk.f32.mxu1 %vm2352_vm1, %v2351_v8 }
 0xe3a   :  { %v1715_v33 = vpop.f32.mrb[20].mxu1 }
 0xe3b   :  { %v2249_v35 = vpop.f32.mrb[21].mxu1  ;;  %2253 = vmatmul.mubr.msk.f32.vlgmr.msra.gmra.mrb[20].mxu0 %vm120_vm2, %v1715_v33 }
 0xe3c   :  { %2262 = vmatprep.mubr.msk.f32.mxu0 %vm2352_vm1, %v2351_v8 }
 0xe3e   :  { %v1867_v36 = vpop.f32.mrb[22].mxu1 }
 0xe3f   :  { %v1868_v37 = vadd.f32 %v1867_v36, %v2440_v18  ;;  %v2259_v38 = vpop.f32.mrb[23].mxu1 }
 0xe41   :  { %v1871_v39 = vsel %vm120_vm2, %v1868_v37, -inf }
 0xe42   :  { %1872 = vmax.xlane.f32.xlu1 %v1871_v39 }
 0xecf   :  { %v1873_v40 = vpop.xlane.xlu1 %1872 }
 0xed0   :  { %v1874_v41 = vsub.f32 %v1868_v37, %v1873_v40 }
 0xed2   :  { %v1875_v34 = vmul.f32 1.442695, %v1874_v41 }
 0xed4   :  { %2323 = vpow2.f32 %v1875_v34 }
 0xede   :  { %v2324_v42 = vpop.eup %2323 }
 0xedf   :  { %v1877_v43 = vsel %vm120_vm2, %v2324_v42, 0.0 }
 0xee0   :  { %1878 = vadd.xlane.f32.xlu0 %v1877_v43 }
 0xef6   :  { %1882 = vrot.lane.b32.xlu0 %v2419_v9, %s2364_s15 }
 0xf0e   :  { %v1788_v44 = vpop.f32.mrb[20].mxu0 }
 0xf0f   :  { %v1792_v8 = vadd.f32 %v1788_v44, %v1551_v17  ;;  %v2254_v45 = vpop.f32.mrb[21].mxu0 }
 0xf6d   :  { %v1879_v47 = vpop.xlane.xlu0 %1878 }
 0xf6e   :  { %2325 = vrcp.f32 %v1879_v47 }
 0xf71   :  { %v1883_v18 = vpop.permute.xlu0 %1882 }
 0xf72   :  { %2261 = vmatpush3.msra.mxu0 %v1883_v18 }
 0xf78   :  { %v2326_v48 = vpop.eup %2325 }
 0xf79   :  { %v1881_v49 = vmul.f32 %v2326_v48, %v2324_v42 }
 0xf7b   :  { %2263 = vmatmul.mubr.msk.f32.vlgmr.msra.gmra.mrb[22].mxu0 %vm120_vm2, %v1881_v49 }
0x104e   :  { %v1954_v50 = vpop.f32.mrb[22].mxu0 }
0x104f   :  { %v2264_v51 = vpop.f32.mrb[23].mxu0  ;;  %2268 = vmatmul.mubr.msk.f32.vlgmr.msra.gmra.mrb[24].mxu1 %vm120_vm2, %v1954_v50 }
0x1122   :  { %v2027_v52 = vpop.f32.mrb[24].mxu1 }
0x1123   :  { %v2031_v53 = vadd.f32 %v2027_v52, %v1792_v8  ;;  %v2269_v9 = vpop.f32.mrb[25].mxu1 }
0x1125   :  { %v2032_v54 = vadd.f32 %v2576_v57, %v2031_v53 }
0x1127   :  { %2033 = vst.msk [vmem:[#allocation2 + $0x8] sm:$0xff] %vm29_vm0, %v2032_v54 }
0x1128   :  { %2338 = shalt.err (!%p2335_p4)
}
0x1129   :  { %s2339_s23 = scalar_lea.hbm %s2649_s4, 256 }
0x112a   :  { %p2340_p5 = scmp.ne.s32.totalorder %s2649_s4, %s2339_s23  ;;  %p2343_p6 = scmp.lt.u32.totalorder %s2339_s23, %s2649_s4 }
0x112c   :  { %p2345_p7 = pnand %p2343_p6, %p2340_p5 }
0x112e   :  { %2348 = shalt.err (!%p2345_p7)
}
0x112f   :  { %s2366_s0 = smov 128   ;;  %s2367_s27 = smov 8  }
0x1130   :  { %2045 = dma.vmem_to_hbm [thread:$0]  %s2040_s19, 256, %s2649_s4, [#allocation3], %s2366_s0, %s2366_s0, %s2367_s27  }
0x1131   :  { %2349 = dma.done.wait [#allocation3], 256  }
0x1132   :  { %2350 = vsyncadd [#allocation3], 4294967040 }
0x1133   :  { %2049 = vsyncpa [#allocation3], 1 }

</bundles_post_ra>
